<compile_context>
chip_gen: v6e
topology: v6e:2x2x1
jax: 0.10.0
libtpu: 0.0.40
codegen_flags: <defaults>
</compile_context>

<pallas_src>
import functools
import math

import jax
import jax.numpy as jnp
from jax import lax
from jax.experimental import pallas as pl
from jax.experimental.pallas import tpu as pltpu


# Largest per-layer weight (bf16 bytes) kept fully VMEM-resident across the grid.
# Double-buffered by the pipeline -> <= ~24 MiB of weight buffers, leaving headroom on
# v7x (64 MiB physical per TensorCore).  Bigger weights stream one tap per grid step.
_WEIGHT_RESIDENT_BYTES = 12 * 1024 * 1024


def _vmem_limit(*bufs):
    """bufs: (bytes, copies).  Scoped-VMEM budget derived from the actual tiles."""
    total = sum(int(b) * int(c) for b, c in bufs) + (4 << 20)  # + compiler slack
    return int(max(total, 16 << 20))


def _time_tiles(t_out, time_tile):
    time_tile = max(8, (int(time_tile) // 8) * 8)
    if t_out <= time_tile:
        return t_out, 1
    return time_tile, -(-t_out // time_tile)


# ----------------------------------------------------------------------------------
# Pallas kernels
# ----------------------------------------------------------------------------------
def _assemble_padded_input(x_ref, l_ref, r_ref, xpad_ref, *, pad, t_in, extra):
    """Build the ReflectionPad1d-padded activation in VMEM (fused pad, no HBM copy)."""
    xpad_ref[pad:pad + t_in, :] = x_ref[0]
    if pad > 0:
        xpad_ref[0:pad, :] = l_ref[0]
        xpad_ref[pad + t_in:pad + t_in + pad, :] = r_ref[0]
    if extra > 0:  # zero the tail so the (discarded) ragged output rows stay finite
        xpad_ref[pad + t_in + pad:, :] = jnp.zeros(
            (extra, xpad_ref.shape[1]), xpad_ref.dtype)


def _conv_resident_kernel(x_ref, l_ref, r_ref, w_ref, s_ref, b_ref, o_ref,
                          xpad_ref, acc_ref, *, ksize, dilation, tt, pad, t_in,
                          extra, clamp):
    """Stride-1 conv block, weights fully VMEM-resident.  grid = (batch, time_tiles)."""
    t = pl.program_id(1)

    @pl.when(t == 0)  # once per batch (time axis is "arbitrary" -> in-order tiles)
    def _():
        _assemble_padded_input(x_ref, l_ref, r_ref, xpad_ref,
                               pad=pad, t_in=t_in, extra=extra)

    base = t * tt
    for k in range(ksize):                                     # static unroll over taps
        xk = xpad_ref[pl.ds(base + k * dilation, tt), :]       # (tt, c_in) bf16
        d = jnp.dot(xk, w_ref[k], preferred_element_type=jnp.float32)
        if k == 0:
            acc_ref[...] = d
        else:
            acc_ref[...] += d

    y = acc_ref[...] * s_ref[...] + b_ref[...]                 # folded conv-bias + BN
    if clamp:
        y = jnp.clip(y, 0.0, 20.0)
    o_ref[0] = y.astype(o_ref.dtype)


def _conv_stream_kernel(x_ref, l_ref, r_ref, w_ref, s_ref, b_ref, o_ref,
                        xpad_ref, acc_ref, *, dilation, tt, pad, t_in, extra, clamp):
    """Stride-1 conv block, one kernel tap per grid step (weights too big to pin).
    grid = (batch, time_tiles, K)."""
    t = pl.program_id(1)
    k = pl.program_id(2)
    nk = pl.num_programs(2)

    @pl.when((t == 0) & (k == 0))
    def _():
        _assemble_padded_input(x_ref, l_ref, r_ref, xpad_ref,
                               pad=pad, t_in=t_in, extra=extra)

    @pl.when(k == 0)
    def _():
        acc_ref[...] = jnp.zeros_like(acc_ref)

    xk = xpad_ref[pl.ds(t * tt + k * dilation, tt), :]
    acc_ref[...] += jnp.dot(xk, w_ref[0], preferred_element_type=jnp.float32)

    @pl.when(k == nk - 1)
    def _():
        y = acc_ref[...] * s_ref[...] + b_ref[...]
        if clamp:
            y = jnp.clip(y, 0.0, 20.0)
        o_ref[0] = y.astype(o_ref.dtype)


def _head_kernel(x_ref, w1_ref, s1_ref, b1_ref, w2_ref, s2_ref, b2_ref, o_ref):
    """Fused (896->1024 conv1x1 + BN + clamp) -> (1024->labels conv1x1) -> softmax.
    The label dim is padded to 128 lanes; padded lanes carry bias -1e30 -> exp == 0."""
    h = jnp.dot(x_ref[0], w1_ref[...], preferred_element_type=jnp.float32)
    h = jnp.clip(h * s1_ref[...] + b1_ref[...], 0.0, 20.0)
    logits = jnp.dot(h.astype(w2_ref.dtype), w2_ref[...],
                     preferred_element_type=jnp.float32)
    logits = logits * s2_ref[...] + b2_ref[...]
    logits = logits - jnp.max(logits, axis=-1, keepdims=True)
    e = jnp.exp(logits)
    o_ref[0] = (e / jnp.sum(e, axis=-1, keepdims=True)).astype(o_ref.dtype)


# ----------------------------------------------------------------------------------
# Per-block wrappers
# ----------------------------------------------------------------------------------
def conv1d_block_pallas(x, w, scale, bias, *, dilation, pad, clamp, time_tile=256):
    """x: (N, T, C_in), w: (K, C_in, C_out).  Stride-1 ReflectionPad+Conv+BN+clamp."""
    x = x.astype(jnp.bfloat16)
    w = w.astype(jnp.bfloat16)
    n, t_in, c_in = x.shape
    ksize, _, c_out = w.shape
    assert pad < t_in, "ReflectionPad1d requires pad < length"

    t_out = t_in + 2 * pad - dilation * (ksize - 1)
    tt, t_tiles = _time_tiles(t_out, time_tile)
    t_out_p = tt * t_tiles
    extra = t_out_p - t_out
    xpad_len = t_out_p + dilation * (ksize - 1)

    if pad > 0:  # tiny boundary slabs; the padded activation is assembled in VMEM
        left = jnp.flip(x[:, 1:pad + 1, :], axis=1)
        right = jnp.flip(x[:, t_in - 1 - pad:t_in - 1, :], axis=1)
    else:
        left = jnp.zeros((n, 1, c_in), x.dtype)
        right = jnp.zeros((n, 1, c_in), x.dtype)
    lpad = left.shape[1]

    scale2 = scale.reshape(1, c_out).astype(jnp.float32)
    bias2 = bias.reshape(1, c_out).astype(jnp.float32)
    out_shape = jax.ShapeDtypeStruct((n, t_out_p, c_out), jnp.bfloat16)
    scratch_shapes = [pltpu.VMEM((xpad_len, c_in), jnp.bfloat16),
                      pltpu.VMEM((tt, c_out), jnp.float32)]

    resident = w.size * 2 <= _WEIGHT_RESIDENT_BYTES
    w_block_elems = (ksize if resident else 1) * c_in * c_out
    vmem = _vmem_limit((t_in * c_in * 2, 2), (lpad * c_in * 2, 4),
                       (w_block_elems * 2, 2), (tt * c_out * 2, 2), (c_out * 4, 4),
                       (xpad_len * c_in * 2, 1), (tt * c_out * 4, 1))

    if resident:
        kernel = functools.partial(_conv_resident_kernel, ksize=ksize,
                                   dilation=dilation, tt=tt, pad=pad, t_in=t_in,
                                   extra=extra, clamp=clamp)
        grid = (n, t_tiles)
        in_specs = [
            pl.BlockSpec((1, t_in, c_in), lambda b, t: (b, 0, 0)),
            pl.BlockSpec((1, lpad, c_in), lambda b, t: (b, 0, 0)),
            pl.BlockSpec((1, lpad, c_in), lambda b, t: (b, 0, 0)),
            pl.BlockSpec((ksize, c_in, c_out), lambda b, t: (0, 0, 0)),  # weights pinned
            pl.BlockSpec((1, c_out), lambda b, t: (0, 0)),
            pl.BlockSpec((1, c_out), lambda b, t: (0, 0)),
        ]
        out_specs = pl.BlockSpec((1, tt, c_out), lambda b, t: (b, t, 0))
        dims = ("parallel", "arbitrary")
    else:
        # TODO(synk): pipeline_mode=pl.Buffered(3) on the weight spec would hide more
        #             of the streamed-weight DMA.
        kernel = functools.partial(_conv_stream_kernel, dilation=dilation, tt=tt,
                                   pad=pad, t_in=t_in, extra=extra, clamp=clamp)
        grid = (n, t_tiles, ksize)
        in_specs = [
            pl.BlockSpec((1, t_in, c_in), lambda b, t, k: (b, 0, 0)),
            pl.BlockSpec((1, lpad, c_in), lambda b, t, k: (b, 0, 0)),
            pl.BlockSpec((1, lpad, c_in), lambda b, t, k: (b, 0, 0)),
            pl.BlockSpec((1, c_in, c_out), lambda b, t, k: (k, 0, 0)),
            pl.BlockSpec((1, c_out), lambda b, t, k: (0, 0)),
            pl.BlockSpec((1, c_out), lambda b, t, k: (0, 0)),
        ]
        out_specs = pl.BlockSpec((1, tt, c_out), lambda b, t, k: (b, t, 0))
        dims = ("parallel", "arbitrary", "arbitrary")

    y = pl.pallas_call(
        kernel,
        out_shape=out_shape,
        grid_spec=pltpu.PrefetchScalarGridSpec(
            num_scalar_prefetch=0, grid=grid, in_specs=in_specs,
            out_specs=out_specs, scratch_shapes=scratch_shapes),
        compiler_params=pltpu.CompilerParams(dimension_semantics=dims,
                                             vmem_limit_bytes=vmem),
    )(x, left, right, w, scale2, bias2)
    if extra > 0:
        y = y[:, :t_out, :]
    return y


def head_block_pallas(x, p1, p2, *, time_tile=256):
    """Fused final layers: 1x1 conv (BN+clamp) -> 1x1 conv -> softmax over labels."""
    x = x.astype(jnp.bfloat16)
    n, t_len, c_in = x.shape
    w1 = p1["w"][0].astype(jnp.bfloat16)                      # (896, 1024)
    s1 = p1["scale"].reshape(1, -1).astype(jnp.float32)
    b1 = p1["bias"].reshape(1, -1).astype(jnp.float32)
    c_mid = w1.shape[1]
    num_labels = p2["w"].shape[-1]
    cp = max(128, -(-num_labels // 128) * 128)                # lane-dense label dim
    w2 = jnp.zeros((c_mid, cp), jnp.bfloat16).at[:, :num_labels].set(
        p2["w"][0].astype(jnp.bfloat16))
    s2 = jnp.ones((1, cp), jnp.float32).at[0, :num_labels].set(
        p2["scale"].astype(jnp.float32))
    b2 = jnp.full((1, cp), -1e30, jnp.float32).at[0, :num_labels].set(
        p2["bias"].astype(jnp.float32))

    tt, t_tiles = _time_tiles(t_len, time_tile)
    t_p = tt * t_tiles
    if t_p > t_len:
        x = jnp.pad(x, ((0, 0), (0, t_p - t_len), (0, 0)))

    vmem = _vmem_limit((tt * c_in * 2, 2), (c_in * c_mid * 2, 2), (c_mid * 4, 4),
                       (c_mid * cp * 2, 2), (cp * 4, 6), (tt * cp * 4, 2))
    out = pl.pallas_call(
        _head_kernel,
        out_shape=jax.ShapeDtypeStruct((n, t_p, cp), jnp.float32),
        grid_spec=pltpu.PrefetchScalarGridSpec(
            num_scalar_prefetch=0,
            grid=(n, t_tiles),
            in_specs=[
                pl.BlockSpec((1, tt, c_in), lambda b, t: (b, t, 0)),
                pl.BlockSpec((c_in, c_mid), lambda b, t: (0, 0)),
                pl.BlockSpec((1, c_mid), lambda b, t: (0, 0)),
                pl.BlockSpec((1, c_mid), lambda b, t: (0, 0)),
                pl.BlockSpec((c_mid, cp), lambda b, t: (0, 0)),
                pl.BlockSpec((1, cp), lambda b, t: (0, 0)),
                pl.BlockSpec((1, cp), lambda b, t: (0, 0)),
            ],
            out_specs=pl.BlockSpec((1, tt, cp), lambda b, t: (b, t, 0))),
        compiler_params=pltpu.CompilerParams(
            dimension_semantics=("parallel", "parallel"),
            vmem_limit_bytes=vmem),
    )(x, w1, s1, b1, w2, s2, b2)
    return out[:, :t_len, :num_labels]


def _layer0_im2col(x, p):
    """Strided first layer: ReflectionPad + im2col (wrapper-side, tiny tensor) so the
    kernel runs a single dense (T_out, K*C_in)@(K*C_in, 256) matmul — no strided
    in-kernel slices, full-depth MXU passes."""
    ksize, c_in, c_out = p["w"].shape
    stride, dil, pad = p["stride"], p["dil"], p["pad"]
    xb = x.astype(jnp.bfloat16)
    if pad > 0:
        xb = jnp.pad(xb, ((0, 0), (pad, pad), (0, 0)), mode="reflect")
    t_pad = xb.shape[1]
    t_out = (t_pad - dil * (ksize - 1) - 1) // stride + 1
    cols = [xb[:, k * dil:k * dil + stride * (t_out - 1) + 1:stride, :]
            for k in range(ksize)]
    xcol = jnp.concatenate(cols, axis=-1)                 # (N, T_out, K*C_in), k-major
    wcol = p["w"].reshape(1, ksize * c_in, c_out)         # matches k-major concat
    return xcol, wcol


def wave_to_letter_forward(x_ncl, params, *, time_tile=256):
    """x_ncl: (N, C_in, T) as in the PyTorch module; returns (N, T_out, num_labels)."""
    x = jnp.transpose(x_ncl, (0, 2, 1)).astype(jnp.float32)   # -> (N, T, C)
    # Layer 0 (stride 2): im2col + dense block.
    p0 = params[0]
    xcol, wcol = _layer0_im2col(x, p0)
    x = conv1d_block_pallas(xcol, wcol, p0["scale"], p0["bias"], dilation=1, pad=0,
                            clamp=p0["clamp"], time_tile=time_tile)
    # Layers 1..16 (stride 1).
    for p in params[1:17]:
        x = conv1d_block_pallas(x, p["w"], p["scale"], p["bias"], dilation=p["dil"],
                                pad=p["pad"], clamp=p["clamp"], time_tile=time_tile)
    # Layers 17, 18 + InferenceBatchSoftmax fused into one kernel.
    return head_block_pallas(x, params[17], params[18], time_tile=time_tile)


# ----------------------------------------------------------------------------------
# Model construction (deterministic synthetic parameters)
# ----------------------------------------------------------------------------------
def _same_pad(c_in, k, stride, dilation):
    """Exactly reproduces Cov1dBlock's padding formula (input_rows = channel count)."""
    out_rows = (c_in + stride - 1) // stride
    padding_rows = max(0, (out_rows - 1) * stride + (k - 1) * dilation + 1 - c_in)
    return padding_rows // 2


def build_wave_to_letter_params(key, sample_rate, window_size, num_labels):
    nfft = sample_rate * window_size
    input_size = int(1 + nfft / 2)

    cfgs = [dict(c_in=input_size, c_out=256, k=11, stride=2, dil=1, bn=True, act=True)]
    c = 256
    group_out = [256, 384, 512, 640, 768]
    group_k = [11, 13, 17, 21, 25]
    for idx in range(15):
        g = idx // 3
        cfgs.append(dict(c_in=c, c_out=group_out[g], k=group_k[g],
                         stride=1, dil=1, bn=True, act=True))
        c = group_out[g]
    cfgs.append(dict(c_in=c, c_out=896, k=29, stride=1, dil=2, bn=True, act=True))
    cfgs.append(dict(c_in=896, c_out=1024, k=1, stride=1, dil=1, bn=True, act=True))
    cfgs.append(dict(c_in=1024, c_out=num_labels, k=1, stride=1, dil=1,
                     bn=False, act=False))

    params = []
    for cfg in cfgs:
        key, kw, kb, kg, kbeta, km, kv = jax.random.split(key, 7)
        c_in, c_out, ksz = cfg["c_in"], cfg["c_out"], cfg["k"]
        wb = math.sqrt(6.0 / (c_in * ksz))
        w = jax.random.uniform(kw, (ksz, c_in, c_out), jnp.float32, -wb, wb)
        b = jax.random.uniform(kb, (c_out,), jnp.float32, -0.05, 0.05)
        if cfg["bn"]:
            gamma = jax.random.uniform(kg, (c_out,), jnp.float32, 0.8, 1.2)
            beta = jax.random.uniform(kbeta, (c_out,), jnp.float32, -0.1, 0.1)
            mean = jax.random.uniform(km, (c_out,), jnp.float32, -0.1, 0.1)
            var = jax.random.uniform(kv, (c_out,), jnp.float32, 0.8, 1.2)
            scale = gamma / jnp.sqrt(var + 1e-3)            # BatchNorm1d eps=0.001
            bias = (b - mean) * scale + beta
        else:
            scale = jnp.ones((c_out,), jnp.float32)
            bias = b
        params.append(dict(w=w, scale=scale, bias=bias,
                           pad=_same_pad(c_in, ksz, cfg["stride"], cfg["dil"]),
                           stride=cfg["stride"], dil=cfg["dil"], clamp=cfg["act"]))
    return params, input_size


# ----------------------------------------------------------------------------------
# Pure-JAX reference (mirrors the kernels' precision policy: bf16 operands,
# f32 accumulation/epilogue — i.e. the eval-mode semantics of the PyTorch module).
# ----------------------------------------------------------------------------------
def wave_to_letter_reference(x_ncl, params):
    x = jnp.transpose(x_ncl, (0, 2, 1)).astype(jnp.float32)
    for p in params:
        xb = x.astype(jnp.bfloat16)
        if p["pad"] > 0:
            xb = jnp.pad(xb, ((0, 0), (p["pad"], p["pad"]), (0, 0)), mode="reflect")
        y = lax.conv_general_dilated(
            xb, p["w"].astype(jnp.bfloat16), window_strides=(p["stride"],),
            padding="VALID", rhs_dilation=(p["dil"],),
            dimension_numbers=("NWC", "WIO", "NWC"),
            preferred_element_type=jnp.float32)
        y = y * p["scale"][None, None, :] + p["bias"][None, None, :]
        if p["clamp"]:
            y = jnp.clip(y, 0.0, 20.0)
        x = y
    return jax.nn.softmax(x, axis=-1)


# ----------------------------------------------------------------------------------
if __name__ == "__main__":
    # Small config: sample_rate * window_size = 32 -> input_size = 17 frequency bins.
    sample_rate, window_size = 16, 2.0
    labels = "abc"
    N, T = 2, 64

    key = jax.random.PRNGKey(0)
    kp, kx = jax.random.split(key)
    params, c_in = build_wave_to_letter_params(kp, sample_rate, window_size, len(labels))

    x = jax.random.normal(kx, (N, c_in, T), jnp.float32)       # PyTorch NCW input

    # time_tile=16 so the multi-tile path is exercised even at this tiny length
    # (default 256 at realistic utterance lengths).
    out = jax.block_until_ready(wave_to_letter_forward(x, params, time_tile=16))
    ref = jax.block_until_ready(wave_to_letter_reference(x, params))

    assert out.shape == (N, T // 2, len(labels)), out.shape
    assert bool(jnp.all(jnp.isfinite(out)))
    assert bool(jnp.allclose(jnp.sum(out, axis=-1), 1.0, atol=1e-3))
    assert bool(jnp.allclose(out, ref, atol=1e-2, rtol=1e-2)), \
        float(jnp.max(jnp.abs(out - ref)))
    print("KERNEL_OK")
</pallas_src>

<mosaic_0001>
module attributes {stable_mosaic.version = 11 : i64} {
  func.func @_conv_resident_kernel(%arg0: i32, %arg1: i32, %arg2: memref<1x32x187xbf16, #tpu.memory_space<vmem>>, %arg3: memref<1x1x187xbf16, #tpu.memory_space<vmem>>, %arg4: memref<1x1x187xbf16, #tpu.memory_space<vmem>>, %arg5: memref<1x187x256xbf16, #tpu.memory_space<vmem>>, %arg6: memref<1x256xf32, #tpu.memory_space<vmem>>, %arg7: memref<1x256xf32, #tpu.memory_space<vmem>>, %arg8: memref<1x16x256xbf16, #tpu.memory_space<vmem>>, %arg9: memref<32x187xbf16, #tpu.memory_space<vmem>>, %arg10: memref<16x256xf32, #tpu.memory_space<vmem>>) attributes {dimension_semantics = [#tpu.dimension_semantics<parallel>, #tpu.dimension_semantics<arbitrary>], iteration_bounds = array<i64: 2, 2>, scalar_prefetch = 0 : i64, scratch_operands = 2 : i64, tpu.core_type = #tpu.core_type<tc>, window_params = [{transform_indices = @transform_0, window_bounds = array<i64: 1, 32, 187>}, {transform_indices = @transform_1, window_bounds = array<i64: 1, 1, 187>}, {transform_indices = @transform_2, window_bounds = array<i64: 1, 1, 187>}, {pipeline_mode = #tpu.pipeline_mode<synchronous>, transform_indices = @transform_3, window_bounds = array<i64: 1, 187, 256>}, {pipeline_mode = #tpu.pipeline_mode<synchronous>, transform_indices = @transform_4, window_bounds = array<i64: 1, 256>}, {pipeline_mode = #tpu.pipeline_mode<synchronous>, transform_indices = @transform_5, window_bounds = array<i64: 1, 256>}, {transform_indices = @transform_6, window_bounds = array<i64: 1, 16, 256>}]} {
    %c0_i32 = arith.constant 0 : i32
    %0 = arith.cmpi eq, %arg1, %c0_i32 : i32
    %1 = arith.extui %0 : i1 to i32
    %c0_i32_0 = arith.constant 0 : i32
    %2 = arith.cmpi ne, %1, %c0_i32_0 : i32
    scf.if %2 {
      %c0_18 = arith.constant 0 : index
      %c0_19 = arith.constant 0 : index
      %c0_20 = arith.constant 0 : index
      %26 = vector.load %arg2[%c0_18, %c0_19, %c0_20] : memref<1x32x187xbf16, #tpu.memory_space<vmem>>, vector<1x32x187xbf16>
      %27 = vector.shape_cast %26 : vector<1x32x187xbf16> to vector<32x187xbf16>
      %c0_21 = arith.constant 0 : index
      %c0_22 = arith.constant 0 : index
      %28 = vector.load %arg9[%c0_21, %c0_22] : memref<32x187xbf16, #tpu.memory_space<vmem>>, vector<32x187xbf16>
      tpu.vector_store %arg9[%c0_21, %c0_22], %27 {strides = array<i32>} : memref<32x187xbf16, #tpu.memory_space<vmem>>, vector<32x187xbf16>,
    } else {
    }
    %c16_i32 = arith.constant 16 : i32
    %3 = arith.muli %arg1, %c16_i32 : i32
    %c0_i32_1 = arith.constant 0 : i32
    %4 = arith.addi %3, %c0_i32_1 : i32
    %5 = arith.index_cast %4 : i32 to index
    %c0 = arith.constant 0 : index
    %6 = vector.load %arg9[%5, %c0] : memref<32x187xbf16, #tpu.memory_space<vmem>>, vector<16x187xbf16>
    %c0_2 = arith.constant 0 : index
    %c0_3 = arith.constant 0 : index
    %c0_4 = arith.constant 0 : index
    %7 = vector.load %arg5[%c0_2, %c0_3, %c0_4] : memref<1x187x256xbf16, #tpu.memory_space<vmem>>, vector<1x187x256xbf16>
    %8 = vector.shape_cast %7 : vector<1x187x256xbf16> to vector<187x256xbf16>
    %cst = arith.constant dense<0.000000e+00> : vector<16x256xf32>
    %9 = tpu.matmul %6, %8, %cst {dimension_numbers = #tpu.dot_dimension_numbers<[1], [0], [0], [1], [0, 0, 1, 1], [], []>} : vector<16x187xbf16>, vector<187x256xbf16>, vector<16x256xf32> -> vector<16x256xf32>
    %c0_5 = arith.constant 0 : index
    %c0_6 = arith.constant 0 : index
    %10 = vector.load %arg10[%c0_5, %c0_6] : memref<16x256xf32, #tpu.memory_space<vmem>>, vector<16x256xf32>
    tpu.vector_store %arg10[%c0_5, %c0_6], %9 {strides = array<i32>} : memref<16x256xf32, #tpu.memory_space<vmem>>, vector<16x256xf32>,
    %c0_7 = arith.constant 0 : index
    %c0_8 = arith.constant 0 : index
    %11 = vector.load %arg10[%c0_7, %c0_8] : memref<16x256xf32, #tpu.memory_space<vmem>>, vector<16x256xf32>
    %c0_9 = arith.constant 0 : index
    %c0_10 = arith.constant 0 : index
    %12 = vector.load %arg6[%c0_9, %c0_10] : memref<1x256xf32, #tpu.memory_space<vmem>>, vector<1x256xf32>
    %13 = vector.broadcast %12 : vector<1x256xf32> to vector<16x256xf32>
    %14 = arith.mulf %11, %13 : vector<16x256xf32>
    %c0_11 = arith.constant 0 : index
    %c0_12 = arith.constant 0 : index
    %15 = vector.load %arg7[%c0_11, %c0_12] : memref<1x256xf32, #tpu.memory_space<vmem>>, vector<1x256xf32>
    %16 = vector.broadcast %15 : vector<1x256xf32> to vector<16x256xf32>
    %17 = arith.addf %14, %16 : vector<16x256xf32>
    %cst_13 = arith.constant 0.000000e+00 : f32
    %cst_14 = arith.constant 2.000000e+01 : f32
    %18 = vector.broadcast %cst_13 : f32 to vector<16x256xf32>
    %19 = arith.maximumf %18, %17 : vector<16x256xf32>
    %20 = vector.broadcast %cst_14 : f32 to vector<16x256xf32>
    %21 = arith.minimumf %20, %19 : vector<16x256xf32>
    %22 = arith.truncf %21 : vector<16x256xf32> to vector<16x256xbf16>
    %c0_15 = arith.constant 0 : index
    %c0_16 = arith.constant 0 : index
    %c0_17 = arith.constant 0 : index
    %23 = vector.load %arg8[%c0_15, %c0_16, %c0_17] : memref<1x16x256xbf16, #tpu.memory_space<vmem>>, vector<1x16x256xbf16>
    %24 = vector.shape_cast %23 : vector<1x16x256xbf16> to vector<16x256xbf16>
    %25 = vector.shape_cast %22 : vector<16x256xbf16> to vector<1x16x256xbf16>
    tpu.vector_store %arg8[%c0_15, %c0_16, %c0_17], %25 {strides = array<i32>} : memref<1x16x256xbf16, #tpu.memory_space<vmem>>, vector<1x16x256xbf16>,
    return
  }
  func.func @transform_0(%arg0: i32, %arg1: i32) -> (i32, i32, i32) {
    %c0_i32 = arith.constant 0 : i32
    %c0_i32_0 = arith.constant 0 : i32
    %c0_i32_1 = arith.constant 0 : i32
    return %arg0, %c0_i32, %c0_i32_0 : i32, i32, i32
  }
  func.func @transform_1(%arg0: i32, %arg1: i32) -> (i32, i32, i32) {
    %c0_i32 = arith.constant 0 : i32
    %c0_i32_0 = arith.constant 0 : i32
    %c0_i32_1 = arith.constant 0 : i32
    return %arg0, %c0_i32, %c0_i32_0 : i32, i32, i32
  }
  func.func @transform_2(%arg0: i32, %arg1: i32) -> (i32, i32, i32) {
    %c0_i32 = arith.constant 0 : i32
    %c0_i32_0 = arith.constant 0 : i32
    %c0_i32_1 = arith.constant 0 : i32
    return %arg0, %c0_i32, %c0_i32_0 : i32, i32, i32
  }
  func.func @transform_3(%arg0: i32, %arg1: i32) -> (i32, i32, i32) {
    %c0_i32 = arith.constant 0 : i32
    %c0_i32_0 = arith.constant 0 : i32
    %c0_i32_1 = arith.constant 0 : i32
    %c0_i32_2 = arith.constant 0 : i32
    return %c0_i32, %c0_i32_0, %c0_i32_1 : i32, i32, i32
  }
  func.func @transform_4(%arg0: i32, %arg1: i32) -> (i32, i32) {
    %c0_i32 = arith.constant 0 : i32
    %c0_i32_0 = arith.constant 0 : i32
    %c0_i32_1 = arith.constant 0 : i32
    return %c0_i32, %c0_i32_0 : i32, i32
  }
  func.func @transform_5(%arg0: i32, %arg1: i32) -> (i32, i32) {
    %c0_i32 = arith.constant 0 : i32
    %c0_i32_0 = arith.constant 0 : i32
    %c0_i32_1 = arith.constant 0 : i32
    return %c0_i32, %c0_i32_0 : i32, i32
  }
  func.func @transform_6(%arg0: i32, %arg1: i32) -> (i32, i32, i32) {
    %c0_i32 = arith.constant 0 : i32
    %c0_i32_0 = arith.constant 0 : i32
    return %arg0, %arg1, %c0_i32 : i32, i32, i32
  }
}

</mosaic_0001>

<bundles_post_ra>
// kernel: tpu_custom_call.1
= control target key start
LH: loop header
LB: loop body
LE: loop exit
PB: predicated region body
PF: predicated region fallthrough
CT: control target
= control target key end

     0   :  { %s1450_s0 = inlined_call_operand.hbm [shape: bf16[2,32,187], index: 0, kind: input, shape index: {}]   ;;  %s1451_s1 = inlined_call_operand.vmem [shape: bf16[2,1,187], index: 1, kind: input, shape index: {}]   ;;  %s1452_s2 = inlined_call_operand.vmem [shape: bf16[2,1,187], index: 2, kind: input, shape index: {}]   ;;  %s1453_s3 = inlined_call_operand.hbm [shape: bf16[1,187,256], index: 3, kind: input, shape index: {}]   ;;  %s1454_s4 = inlined_call_operand.vmem [shape: f32[1,256], index: 4, kind: input, shape index: {}]   ;;  %s1455_s5 = inlined_call_operand.vmem [shape: f32[1,256], index: 5, kind: input, shape index: {}]   ;;  %s1456_s6 = inlined_call_operand.hbm [shape: bf16[2,32,256], index: 6, kind: output, shape index: {}]  }
   0x1   :  { %1468 = sst [smem:[#allocation19_spill]] %s1453_s3 }
   0x2   :  { %1469 = sst [smem:[#allocation20_spill]] %s1456_s6 }
   0x3   :  { %11 = vsyncpa [#allocation5], 0 }
   0x4   :  { %13 = vsyncpa [#allocation5 + $0x1], 0 }
   0x5   :  { %14 = vsyncpa [#allocation8], 0 }
   0x6   :  { %15 = vsyncpa [#allocation6], 0 }
   0x7   :  { %17 = vsyncpa [#allocation6 + $0x1], 0  ;;  %s1205_s1 = smov 0   ;;  %s1207_s2 = smov 0  }
   0x8   :  { %s1209_s21 = smov 0   ;;  %s1211_s22 = smov 0  }
   0x9   :  { %s1213_s23 = smov 0   ;;  %s1215_s24 = smov 0  }
   0xa   :  { %s1217_s25 = smov 0   ;;  %s1219_s26 = smov 0  }
   0xb   :  { %s1221_s27 = smov 0   ;;  %s1223_s28 = smov 0  }
   0xc   :  { %s1225_s29 = smov 0  }
   0xd LB: > { %1470 = sst [smem:[#allocation13_spill]] %s1120_s1  ;;  %s768_s30 = sadd.s32 4294967295, %s1160_s29   ;;  %s1160_s29 = sphi %s1225_s29, %s23_s29   ;;  %s1156_s28 = sphi %s1223_s28, %s1503_s28   ;;  %s1152_s27 = sphi %s1221_s27, %s1494_s27   ;;  %s1148_s26 = sphi %s1219_s26, %s1502_s26   ;;  %s1144_s25 = sphi %s1217_s25, %s1493_s25   ;;  %s1140_s24 = sphi %s1215_s24, %s1501_s24   ;;  %s1136_s23 = sphi %s1213_s23, %s1500_s23   ;;  %s1132_s22 = sphi %s1211_s22, %s1499_s22   ;;  %s1128_s21 = sphi %s1209_s21, %s1498_s21   ;;  %s1124_s2 = sphi %s1207_s2, %s1497_s2   ;;  %s1120_s1 = sphi %s1205_s1, %s1496_s1  }
   0xe   : > { %1471 = sst [smem:[#allocation14_spill]] %s1152_s27  ;;  %s769_s7 = sadd.s32 4294967294, %s1160_s29  }
   0xf   : > { %p55_p0 = scmp.ne.s32.totalorder %s1136_s23, %s1132_s22  ;;  %p1261_p1 = scmp.eq.s32.totalorder %s768_s30, 0 }
  0x10   : > { %p195_p2 = scmp.ne.s32.totalorder %s1128_s21, %s1124_s2  ;;  %p196_p4 = scmp.eq.s32.totalorder %s768_s30, 3 }
  0x11   : > { %p1270_p3 = por %p1261_p1, %p55_p0  ;;  %p201_p5 = scmp.ne.s32.totalorder %s1124_s2, %s1120_s1 }
  0x12   : > { %p202_p6 = scmp.eq.s32.totalorder %s769_s7, 3  ;;  %p1276_p7 = por %p196_p4, %p195_p2 }
  0x13   : > { %p770_p8 = scmp.ge.s32.totalorder %s1160_s29, 1  ;;  %p209_p10 = scmp.lt.s32.totalorder %s1160_s29, 5 }
  0x14   : > { %s1474_s11 = scalar_select %p1276_p7, 1, 0 }
  0x15   : > { %p1281_p9 = por %p202_p6, %p201_p5  ;;  %p1286_p11 = pnand %p770_p8, %p209_p10 }
  0x16   : > { %1475 = sst [smem:[#allocation15_spill]] %s1474_s11  ;;  %s1162_s14 = smov [#allocation7]  }
  0x17   : > { %s1476_s12 = scalar_select %p1281_p9, 1, 0 }
  0x18   : > { %s221_s15 = sshll.u32 %s1162_s14, 4  ;;  %p833_p12 = pneg %p1286_p11  ;;  %s222_s15 = int_to_ptr.vmem [resolvable:$true] %s221_s15 }
  0x19   : > { %1477 = sst [smem:[#allocation16_spill]] %s1476_s12  ;;  %s993_s16 = scalar_lea.vmem %s222_s15, 3072 }
  0x1a   : > { %p834_p13 = pnand %p833_p12, %p1261_p1  ;;  %p994_p2 = scmp.ne.s32.totalorder %s222_s15, %s993_s16 }
  0x1b   : > { %p1001_p6 = scmp.lt.s32.totalorder %s222_s15, %s222_s15  ;;  %p1002_p9 = scmp.lt.s32.totalorder %s993_s16, %s993_s16 }
  0x1c   : > { %p984_p0 = pneg %p834_p13 }
  0x1d   : > { %p1003_p7 = por %p1002_p9, %p1001_p6 }
  0x1e   : > { %p996_p4 = pnand %p994_p2, %p984_p0 }
  0x20   : > { %p997_p5 = pneg %p996_p4 }
  0x22   : > { %p1004_p8 = pnand %p1003_p7, %p997_p5 }
  0x24   : > { %1007 = shalt.err (!%p1004_p8)
}
  0x25   : > { %s1458_s17 = smov 128   ;;  %s1459_s18 = smov 8  }
  0x26   : > { %s1479_s3 = sld [smem:[#allocation19_spill]]  ;;  %s32_s22 = sadd.s32 1, %s1152_s27 }
  0x27   : > { %p33_p7 = scmp.ge.s32.totalorder %s32_s22, 2  ;;  %s35_s30 = sadd.s32 1, %s1156_s28 }
  0x28   : > { %s42_s7 = sadd.s32 1, %s1140_s24  ;;  %p49_p9 = scmp.ne.s32.totalorder %s1140_s24, %s1136_s23 }
  0x29   : > { %s1505_s22 = smov (%p33_p7, %s32_s22), 0  ;;  %s1507_s30 = smov (!%p33_p7, %s35_s30), %s1156_s28 }
  0x2a   : > { %1480 = sst [smem:[#allocation17_spill]] %s1505_s22  ;;  %p50_p10 = scmp.eq.s32.totalorder %s1160_s29, 0 }
  0x2b   : > { %s181_s14 = ssub.s32 %s1152_s27, %s1505_s22  ;;  %p37_p12 = scmp.ge.s32.totalorder %s1507_s30, 2 }
  0x2c   : > { %836 = dma.hbm_to_vmem [thread:$0]  (!%p834_p13), %s1479_s3, 3072, %s222_s15, [#allocation8], %s1458_s17, %s1458_s17, %s1459_s18  }
  0x2d   : > { %p846_p0 = scmp.lt.s32.totalorder %s1160_s29, 4  ;;  %p1312_p13 = por %p50_p10, %p49_p9 }
  0x2e   : > { %s241_s16 = sand.u32 1, %s1140_s24   ;;  %s1509_s30 = smov (%p37_p12, %s1507_s30), 0 }
  0x2f   : > { %1482 = sst [smem:[#allocation18_spill]] %s1509_s30  ;;  %s773_s19 = sshll.u32 %s241_s16, 5 }
  0x30   : > { %s39_s20 = ssub.s32 %s1156_s28, %s1509_s30  ;;  %s820_s18 = sshll.u32 %s1156_s28, 9 }
  0x31   : > { %p40_p2 = scmp.eq.s32.totalorder %s39_s20, 0  ;;  %s182_s17 = sor.u32 %s181_s14, %s39_s20 }
  0x32   : > { %p183_p4 = scmp.eq.s32.totalorder %s182_s17, 0  ;;  %s1483_s3 = sadd.s32 1, %s1128_s21 }
  0x33   : > { %s1323_s9 = scalar_select %p40_p2, %s1140_s24, %s42_s7  }
  0x34   : > { %s1328_s22 = scalar_select %p183_p4, %s1128_s21, %s1483_s3  }
  0x35   : > { %s251_s1 = scalar_lea.hbm %s1450_s0, %s820_s18  ;;  %s245_s6 = scalar_lea.vmem [#allocation4], %s773_s19 }
  0x36   : > { %s252_s11 = sshll.u32 %s245_s6, 4  ;;  %p1337_p5 = pnand %p846_p0, %p1312_p13  ;;  %s253_s11 = int_to_ptr.vmem [resolvable:$true] %s252_s11 }
  0x37   : > { %s242_s17 = scalar_lea.sflag [#allocation5], %s241_s16  ;;  %s1021_s7 = scalar_lea.vmem %s253_s11, 512 }
  0x38   : > { %p1010_p6 = pneg %p1337_p5  ;;  %p1022_p8 = scmp.ne.s32.totalorder %s253_s11, %s1021_s7 }
  0x39   : > { %s1165_s3 = smov [#allocation4]  }
  0x3a   : > { %p1024_p7 = pnand %p1022_p8, %p1010_p6  ;;  %s1026_s27 = sshll.u32 %s1165_s3, 4  ;;  %s1027_s27 = int_to_ptr.vmem [resolvable:$false] %s1026_s27 }
  0x3b   : > { %s1028_s12 = scalar_lea.vmem %s1027_s27, 1024  ;;  %p1029_p10 = scmp.lt.s32.totalorder %s253_s11, %s1027_s27 }
  0x3c   : > { %p1025_p9 = pneg %p1024_p7  ;;  %p1030_p12 = scmp.lt.s32.totalorder %s1028_s12, %s1021_s7 }
  0x3e   : > { %p1031_p2 = por %p1030_p12, %p1029_p10 }
  0x40   : > { %p1032_p4 = pnand %p1031_p2, %p1025_p9 }
  0x42   : > { %1035 = shalt.err (!%p1032_p4)
}
  0x43   : > { %s1485_s6 = smov 8   ;;  %s1486_s18 = smov 128  }
  0x44   : > { %840 = dma.hbm_to_vmem [thread:$0]  (!%p1337_p5), %s251_s1, 512, %s253_s11, %s242_s17, %s1486_s18, %s1486_s18, %s1485_s6  }
  0x45   : > { %278 = sbr.rel (%p1286_p11) target bundleno = 360 (0x168), region = 44  ;;  %s280_s14 = sand.u32 (!%p1286_p11), 1, %s1136_s23  }
  0x46   : > { %s777_s15 = sshll.u32 (!%p1286_p11), %s280_s14, 5  ;;  %s281_s16 = scalar_lea.sflag (!%p1286_p11), [#allocation5], %s280_s14 }
  0x47   : > { %s284_s19 = scalar_lea.vmem (!%p1286_p11), [#allocation4], %s777_s15 }
  0x4a   : > { %1107 = dma.done.wait (%p1270_p3), %s281_s16, 512  }
  0x4b   : > { %1109 = vsyncadd (%p1270_p3), %s281_s16, 4294966784 }
  0x4c   : > { %1111 = dma.done.wait (%p1261_p1), [#allocation8], 3072  }
  0x4d   : > { %1113 = vsyncadd (%p1261_p1), [#allocation8], 4294964224  ;;  %s322_s1 = sand.u32 1, %s1124_s2   ;;  %p780_p11 = scmp.ne.s32.totalorder %s1144_s25, 0 }
  0x4e   : > { %s779_s11 = sshll.u32 %s322_s1, 4 }
  0x4f   : > { %s1362_s13 = scalar_lea.vmem [#allocation9], %s779_s11  ;;  %338 = sbr.rel (%p780_p11) target bundleno = 88 (0x58), region = 56 }
  0x54   : > { %v339_v0 = vld [vmem:[%s284_s19] sm:$0xff]  ;;  %vm343_vm0 = vcmask 1043456   ;;  %vm344_vm1 = vcmask 482308   ;;  %v340_v1 = vld [vmem:[%s284_s19 + $0x8] sm:$0xff]  ;;  %v341_v2 = vld [vmem:[%s284_s19 + $0x10] sm:$0xff] }
  0x55   : > { %vm345_vm2 = vmor %vm344_vm1, %vm343_vm0  ;;  %v342_v3 = vld [vmem:[%s284_s19 + $0x18] sm:$0xff] }
  0x56   : > { %346 = vst.msk [vmem:[#allocation2] sm:$0xff] %vm345_vm2, %v339_v0  ;;  %347 = vst.msk [vmem:[#allocation2 + $0x8] sm:$0xff] %vm345_vm2, %v340_v1 }
  0x57   : > { %348 = vst.msk [vmem:[#allocation2 + $0x10] sm:$0xff] %vm345_vm2, %v341_v2  ;;  %349 = vst.msk [vmem:[#allocation2 + $0x18] sm:$0xff] %vm345_vm2, %v342_v3 }
  0x58 PF: > { %v943_v4 = vld [vmem:[#allocation7 + $0x74] ss:$8 sps:$4 sm:$0xff]   ;;  %v945_v5 = vld [vmem:[#allocation7 + $0x70] ss:$8 sps:$4 sm:$0xff]   ;;  %v946_v6 = vld [vmem:[#allocation7 + $0x64] ss:$8 sps:$4 sm:$0xff]   ;;  %v576_v35 = vlaneseq }
  0x59   : > { %523 = vmatprep.subr.bf16.mxu0 %v943_v4  ;;  %v948_v7 = vld [vmem:[#allocation7 + $0x60] ss:$8 sps:$4 sm:$0xff]   ;;  %v949_v8 = vld [vmem:[#allocation7 + $0x54] ss:$8 sps:$4 sm:$0xff]   ;;  %v951_v9 = vld [vmem:[#allocation7 + $0x50] ss:$8 sps:$4 sm:$0xff]  }
  0x5a   : > { %524 = vmatpush1.bf16.msra.mxu0 %v945_v5  ;;  %v952_v10 = vld [vmem:[#allocation7 + $0x44] ss:$8 sps:$4 sm:$0xff]   ;;  %v954_v11 = vld [vmem:[#allocation7 + $0x40] ss:$8 sps:$4 sm:$0xff]   ;;  %s781_s8 = sshll.u32 %s1144_s25, 4  ;;  %vm509_vm3 = vcmask 482304  }
  0x5b   : > { %525 = vmatprep.subr.bf16.mxu0 %v946_v6  ;;  %v955_v12 = vld [vmem:[#allocation7 + $0x34] ss:$8 sps:$4 sm:$0xff]   ;;  %v957_v13 = vld [vmem:[#allocation7 + $0x30] ss:$8 sps:$4 sm:$0xff]   ;;  %v958_v14 = vld [vmem:[#allocation7 + $0x24] ss:$8 sps:$4 sm:$0xff]  }
  0x5c   : > { %s1366_s10 = scalar_lea.vmem [#allocation2], %s781_s8  ;;  %v960_v16 = vld [vmem:[#allocation7 + $0x20] ss:$8 sps:$4 sm:$0xff]   ;;  %vm513_vm4 = vcmask 1044480   ;;  %v961_v17 = vld [vmem:[#allocation7 + $0x14] ss:$8 sps:$4 sm:$0xff]  }
  0x5d   : > { %vm514_vm5 = vcmask 1045504   ;;  %v1166_v18 = vmov 65535   ;;  %v963_v20 = vld [vmem:[#allocation7 + $0x10] ss:$8 sps:$4 sm:$0xff]   ;;  %v964_v21 = vld [vmem:[#allocation7 + $0x4] ss:$8 sps:$4 sm:$0xff]  }
  0x5e   : > { %526 = vmatpush1.bf16.msra.mxu0 %v948_v7  ;;  %v981_v15 = vld [vmem:[%s1366_s10 + $0x4] ss:$8 sps:$4 sm:$0xff]   ;;  %v515_v19 = vsel %vm513_vm4, 4294967295, %v1166_v18  ;;  %v967_v22 = vld [vmem:[#allocation7 + $0xb4] ss:$8 sps:$4 sm:$0x3f]  }
  0x5f   : > { %527 = vmatprep.subr.bf16.mxu0 %v949_v8  ;;  %810 = vmatprep.mubr.msk.bf16.mxu0 %vm509_vm3, %v981_v15  ;;  %v516_v23 = vsel %vm514_vm5, %v515_v19, 0  ;;  %v966_v24 = vld [vmem:[#allocation7] ss:$8 sps:$4 sm:$0xff]   ;;  %v969_v25 = vld [vmem:[#allocation7 + $0xb0] ss:$8 sps:$4 sm:$0x3f]  }
  0x60   : > { %v521_v26 = vand.u32 %v967_v22, %v516_v23  ;;  %v518_v27 = vand.u32 %v969_v25, %v516_v23  ;;  %v970_v28 = vld [vmem:[#allocation7 + $0xa4] ss:$8 sps:$4 sm:$0xff]   ;;  %v972_v29 = vld [vmem:[#allocation7 + $0xa0] ss:$8 sps:$4 sm:$0xff]   ;;  %v973_v30 = vld [vmem:[#allocation7 + $0x94] ss:$8 sps:$4 sm:$0xff]  }
  0x61   : > { %v975_v31 = vld [vmem:[#allocation7 + $0x90] ss:$8 sps:$4 sm:$0xff]   ;;  %v976_v32 = vld [vmem:[#allocation7 + $0x84] ss:$8 sps:$4 sm:$0xff]   ;;  %v978_v33 = vld [vmem:[#allocation7 + $0x80] ss:$8 sps:$4 sm:$0xff]  }
  0x62   : > { %528 = vmatpush1.bf16.msra.mxu0 %v951_v9  ;;  %v979_v34 = vld [vmem:[%s1366_s10] ss:$8 sps:$4 sm:$0xff]   ;;  %v577_v36 = vshrl.u32 %v576_v35, 7  ;;  %s824_s3 = sshll.u32 %s1144_s25, 2  ;;  %s816_s27 = sshll.u32 %s1148_s26, 3 }
  0x63   : > { %529 = vmatprep.subr.bf16.mxu0 %v952_v10  ;;  %v574_v38 = vld [vmem:[%s1454_s4] sm:$0x3]  ;;  %s642_s12 = sadd.s32 %s824_s3, %s816_s27  ;;  %s1487_s6 = sld [smem:[#allocation15_spill]] }
  0x64   : > { %v578_v37 = vsub.s32 0, %v577_v36  ;;  %v582_v39 = vsub.s32 1, %v577_v36  ;;  %v590_v40 = vld [vmem:[%s1455_s5] sm:$0x3]  ;;  %s817_s18 = sshll.u32 %s642_s12, 6  ;;  %s645_s14 = sshll.u32 %s1362_s13, 4  ;;  %s1385_s14 = int_to_ptr.vmem [resolvable:$true] %s645_s14 }
  0x65   : > { %s1488_s15 = sld [smem:[#allocation20_spill]]  ;;  %s1390_s19 = scalar_lea.sflag [#allocation6], %s322_s1 }
  0x66   : > { %530 = vmatpush1.bf16.msra.mxu0 %v954_v11  ;;  %v579_v41 = vrot.slane %v574_v38, %v578_v37  ;;  %v595_v42 = vrot.slane %v590_v40, %v578_v37  ;;  %v583_v43 = vrot.slane %v574_v38, %v582_v39  ;;  %v599_v46 = vrot.slane %v590_v40, %v582_v39  ;;  %s1036_s11 = scalar_lea.vmem %s1385_s14, 256  ;;  %s1167_s8 = smov [#allocation9]  }
  0x67   : > { %531 = vmatprep.subr.bf16.mxu0 %v955_v12  ;;  %p1037_p1 = scmp.ne.s32.totalorder %s1385_s14, %s1036_s11  ;;  %s1040_s10 = sshll.u32 %s1167_s8, 4  ;;  %s1041_s10 = int_to_ptr.vmem [resolvable:$false] %s1040_s10 }
  0x68   : > { %s1042_s30 = scalar_lea.vmem %s1041_s10, 512  ;;  %p1043_p5 = scmp.lt.s32.totalorder %s1385_s14, %s1041_s10 }
  0x69   : > { %p1489_p3 = scmp.ne.s32.totalorder %s1487_s6, 0  ;;  %p1044_p6 = scmp.lt.s32.totalorder %s1042_s30, %s1036_s11 }
  0x6a   : > { %532 = vmatpush1.bf16.msra.mxu0 %v957_v13 }
  0x6b   : > { %533 = vmatprep.subr.bf16.mxu0 %v958_v14  ;;  %s1383_s16 = scalar_lea.hbm %s1488_s15, %s817_s18  ;;  %p1038_p0 = pnand %p1037_p1, %p1489_p3 }
  0x6c   : > { %p1045_p8 = por %p1044_p6, %p1043_p5 }
  0x6d   : > { %p1039_p13 = pneg %p1038_p0 }
  0x6e   : > { %534 = vmatpush1.bf16.msra.mxu0 %v960_v16 }
  0x6f   : > { %535 = vmatprep.subr.bf16.mxu0 %v961_v17  ;;  %p1046_p7 = pnand %p1045_p8, %p1039_p13 }
  0x72   : > { %536 = vmatpush1.bf16.msra.mxu0 %v963_v20 }
  0x73   : > { %537 = vmatprep.subr.bf16.mxu0 %v964_v21 }
  0x76   : > { %538 = vmatpush1.bf16.msra.mxu0 %v966_v24 }
  0x77   : > { %547 = vmatprep.subr.bf16.mxu0 %v521_v26 }
  0x7a   : > { %548 = vmatpush2.bf16.msra.mxu0 %v518_v27 }
  0x7b   : > { %549 = vmatprep.subr.bf16.mxu0 %v970_v28 }
  0x7e   : > { %550 = vmatpush2.bf16.msra.mxu0 %v972_v29 }
  0x7f   : > { %551 = vmatprep.subr.bf16.mxu0 %v973_v30 }
  0x82   : > { %552 = vmatpush2.bf16.msra.mxu0 %v975_v31 }
  0x83   : > { %553 = vmatprep.subr.bf16.mxu0 %v976_v32 }
  0x86   : > { %554 = vmatpush2.bf16.msra.mxu0 %v978_v33 }
  0x89   : > { %556 = vmatmul.mubr.bf16.vlgmr.msra.gmra.mxu0 %v979_v34 }
 0x149   : > { %v557_v44 = vpop.f32.mrf.mxu0 }
 0x14a   : > { %v586_v45 = vmul.f32 %v579_v41, %v557_v44 }
 0x14b   : > { %v559_v47 = vpop.f32.mrf.mxu0 }
 0x14c   : > { %v602_v48 = vadd.f32 %v595_v42, %v586_v45  ;;  %v587_v49 = vmul.f32 %v583_v43, %v559_v47 }
 0x14d   : > { %v561_v50 = vpop.f32.mrf.mxu0 }
 0x14e   : > { %v606_v51 = vmax.f32 %v602_v48, 0.0  ;;  %v603_v52 = vadd.f32 %v599_v46, %v587_v49  ;;  %v588_v53 = vmul.f32 %v579_v41, %v561_v50 }
 0x14f   : > { %v563_v54 = vpop.f32.mrf.mxu0 }
 0x150   : > { %v607_v55 = vmax.f32 %v603_v52, 0.0  ;;  %v604_v56 = vadd.f32 %v595_v42, %v588_v53  ;;  %v589_v57 = vmul.f32 %v583_v43, %v563_v54  ;;  %v610_v58 = vmin.f32 %v606_v51, 20.0 }
 0x152   : > { %v611_v59 = vmin.f32 %v607_v55, 20.0  ;;  %v608_v60 = vmax.f32 %v604_v56, 0.0  ;;  %v605_v61 = vadd.f32 %v599_v46, %v589_v57 }
 0x154   : > { %v822_v62 = vpack.c.bf16 %v611_v59, %v610_v58  ;;  %v609_v63 = vmax.f32 %v605_v61, 0.0  ;;  %v612_v0 = vmin.f32 %v608_v60, 20.0 }
 0x156   : > { %626 = vst [vmem:[%s1362_s13] sm:$0xff] %v822_v62  ;;  %v613_v1 = vmin.f32 %v609_v63, 20.0 }
 0x158   : > { %v823_v2 = vpack.c.bf16 %v613_v1, %v612_v0 }
 0x15a   : > { %627 = vst [vmem:[%s1362_s13 + $0x8] sm:$0xff] %v823_v2 }
 0x15b   : > { %1049 = shalt.err (!%p1046_p7)
}
 0x15c   : > { %s1050_s1 = scalar_lea.hbm %s1383_s16, 256  ;;  %s1054_s17 = scalar_lea.hbm %s1488_s15, 1024 }
 0x15d   : > { %p1051_p9 = scmp.ne.s32.totalorder %s1383_s16, %s1050_s1  ;;  %p1055_p2 = scmp.lt.s32.totalorder %s1383_s16, %s1488_s15 }
 0x15e   : > { %p1056_p4 = scmp.lt.s32.totalorder %s1054_s17, %s1050_s1 }
 0x15f   : > { %p1052_p10 = pnand %p1051_p9, %p1489_p3 }
 0x160   : > { %p1057_p11 = por %p1056_p4, %p1055_p2 }
 0x161   : > { %p1053_p12 = pneg %p1052_p10 }
 0x163   : > { %p1058_p1 = pnand %p1057_p11, %p1053_p12 }
 0x165   : > { %1061 = shalt.err (!%p1058_p1)
}
 0x166   : > { %s1168_s27 = smov 128   ;;  %s1169_s12 = smov 8  }
 0x167   : > { %831 = dma.vmem_to_hbm [thread:$0]  (%p1489_p3), %s1385_s14, 256, %s1383_s16, %s1390_s19, %s1168_s27, %s1168_s27, %s1169_s12  }
 0x168 PF: > { %s1490_s18 = sld [smem:[#allocation13_spill]]  ;;  %p848_p0 = scmp.ge.s32.totalorder %s1160_s29, 2 }
 0x169   : > { %s1491_s25 = sld [smem:[#allocation16_spill]] }
 0x16e   : > { %s660_s26 = sand.u32 1, %s1490_s18  }
 0x16f   : > { %p1492_p13 = scmp.ne.s32.totalorder %s1491_s25, 0  ;;  %s661_s11 = scalar_lea.sflag [#allocation6], %s660_s26 }
 0x171   : > { %p842_p5 = pnand %p848_p0, %p1492_p13 }
 0x173   : > { %p843_p6 = pneg %p842_p5 }
 0x175   : > { %1115 = dma.done.wait (%p843_p6), %s661_s11, 256  }
 0x176   : > { %1117 = vsyncadd (%p843_p6), %s661_s11, 4294967040  ;;  %s23_s29 = sadd.s32 1, %s1160_s29   ;;  %s1493_s25 = sld [smem:[#allocation14_spill]] }
 0x177   : > { %p20_p8 = scmp.ge.s32.totalorder %s23_s29, 6   ;;  %s1494_s27 = sld [smem:[#allocation17_spill]] }
 0x178   : > { %s1495_s6 = sld [smem:[#allocation18_spill]]  ;;  %s1496_s1 = smov %s1124_s2 }
 0x179   : > { %s1497_s2 = smov %s1128_s21  ;;  %s1498_s21 = smov %s1328_s22 }
 0x17a   : > { %s1499_s22 = smov %s1136_s23  ;;  %s1500_s23 = smov %s1140_s24 }
 0x17b   : > { %s1501_s24 = smov %s1323_s9  ;;  %s1502_s26 = smov %s1156_s28 }
 0x17c   :  { %22 = sbr.rel (!%p20_p8) target bundleno = 13 (0xd), region = 104 }
 0x17e   : > { %s1503_s28 = smov %s1495_s6 }
 0x181   :  { %666 = vsyncpa [#allocation5], 1 }
 0x182   :  { %668 = vsyncpa [#allocation5 + $0x1], 1 }
 0x183   :  { %669 = vsyncpa [#allocation8], 1 }
 0x184   :  { %670 = vsyncpa [#allocation6], 1 }
 0x185   :  { %672 = vsyncpa [#allocation6 + $0x1], 1 }

</bundles_post_ra>
